<compile_context>
chip_gen: v7x
topology: tpu7x:2x2x1
jax: 0.10.0
libtpu: 0.0.40
codegen_flags: <defaults>
</compile_context>

<pallas_src>
import jax
import jax.numpy as jnp
from jax.experimental import pallas as pl
from jax.experimental.pallas import tpu as pltpu

MXU_DTYPE = jnp.bfloat16   # bf16 MXU operands (f32 accumulation); use jnp.float32 for exact parity


def _round_up(x, m):
    return (x + m - 1) // m * m


def _pad2(w, rows, cols):
    return jnp.zeros((rows, cols), jnp.float32).at[: w.shape[0], : w.shape[1]].set(w)


def _pad_row(v, cols):
    v = v.reshape(1, -1)
    return jnp.zeros((1, cols), jnp.float32).at[:, : v.shape[1]].set(v)


# --------------------------------------------------------------------------
# Fused kernel: per grid step (= per GIN layer)
#   agg = A @ z + z            (GINConv, eps = 0)
#   h   = relu(agg @ W1 + b1) @ W2 + b2
#   h   = relu(h)              (outer F.relu)
#   z   = BatchNorm1d(h)       (training stats, masked to real nodes)
#   write z block, write (P @ z) block, carry z in VMEM scratch
# --------------------------------------------------------------------------
def _make_kernel(inv_n):
    def kernel(a_ref, p_ref, mask_ref, x_ref,
               w1_ref, b1_ref, w2_ref, b2_ref, gamma_ref, beta_ref,
               z_ref, g_ref, z_scr):
        layer = pl.program_id(0)

        # Layer 0 consumes the (padded) input features; later layers consume
        # the z carried across grid steps in VMEM scratch.
        @pl.when(layer == 0)
        def _():
            z_scr[...] = x_ref[...]

        z_in = z_scr[...]                                    # (NP, W) f32

        # GINConv with eps = 0: (1 + eps) * x_i + sum_{j in N(i)} x_j
        agg = jnp.dot(a_ref[...], z_in.astype(MXU_DTYPE),
                      preferred_element_type=jnp.float32) + z_in

        # MLP: Linear -> ReLU -> Linear
        h = jnp.dot(agg.astype(MXU_DTYPE), w1_ref[0],
                    preferred_element_type=jnp.float32) + b1_ref[0]
        h = jnp.maximum(h, 0.0)
        h = jnp.dot(h.astype(MXU_DTYPE), w2_ref[0],
                    preferred_element_type=jnp.float32) + b2_ref[0]

        # outer F.relu
        h = jnp.maximum(h, 0.0)

        # BatchNorm1d, training-mode batch statistics (biased variance,
        # eps = 1e-5), one-pass masked sum / sum-of-squares over real nodes.
        m = mask_ref[...]                                    # (NP, 1)
        hm = h * m
        s1 = jnp.sum(hm, axis=0, keepdims=True)
        s2 = jnp.sum(hm * h, axis=0, keepdims=True)
        mean = s1 * inv_n
        var = jnp.maximum(s2 * inv_n - mean * mean, 0.0)
        z_out = (h - mean) * jax.lax.rsqrt(var + 1e-5)
        z_out = z_out * gamma_ref[0] + beta_ref[0]

        z_scr[...] = z_out                                   # carry to next layer
        z_ref[...] = z_out                                   # lane-dense block store
        # Fused global_add_pool (P is 0/1; kept in f32 so pooled sums are exact).
        g_ref[...] = jnp.dot(p_ref[...], z_out,
                             preferred_element_type=jnp.float32)

    return kernel


# --------------------------------------------------------------------------
# GConv forward.  The `self.project` MLP is defined in __init__ but never used
# in forward, so it is intentionally omitted.
# --------------------------------------------------------------------------
def gconv_forward(params, x, edge_index, batch, num_graphs):
    n, din = x.shape
    num_layers = len(params)
    hidden = params[0]["w2"].shape[1]

    # Padding: sublane multiple (8) on node/graph axes, lane multiple (128) on
    # the feature axis (lane-dense stores + MXU-friendly matmul widths).
    width = _round_up(max(din, hidden), 128)   # uniform padded feature width
    n_pad = _round_up(max(n, 8), 8)
    g_pad = _round_up(max(num_graphs, 8), 8)

    # Dense adjacency A[dst, src] = #edges src->dst (PyG: edge_index[0]=src,
    # edge_index[1]=dst, aggregation at dst).  Small integer counts are exact
    # in bf16; padded nodes have no edges.
    src, dst = edge_index[0], edge_index[1]
    a = (jnp.zeros((n_pad, n_pad), jnp.float32)
         .at[dst, src].add(1.0)).astype(MXU_DTYPE)

    # One-hot pooling matrix P[g, i] = [batch[i] == g]; padded nodes/graphs -> 0.
    p = (batch[None, :] == jnp.arange(g_pad, dtype=batch.dtype)[:, None])
    p = jnp.pad(p.astype(jnp.float32), ((0, 0), (0, n_pad - n)))

    # Mask of real node rows (BatchNorm statistics must ignore padded rows).
    mask = jnp.zeros((n_pad, 1), jnp.float32).at[:n, :].set(1.0)

    # Zero-padded input features (layer 0 input shares the carried width).
    xp = jnp.zeros((n_pad, width), jnp.float32).at[:n, :din].set(x)

    # Stack + zero-pad per-layer parameters to [L, ...]; weights pre-cast to
    # the MXU dtype so no per-step cast of the big operands is needed.
    w1 = jnp.stack([_pad2(q["w1"], width, width) for q in params]).astype(MXU_DTYPE)
    w2 = jnp.stack([_pad2(q["w2"], width, width) for q in params]).astype(MXU_DTYPE)
    b1 = jnp.stack([_pad_row(q["b1"], width) for q in params])
    b2 = jnp.stack([_pad_row(q["b2"], width) for q in params])
    gamma = jnp.stack([_pad_row(q["gamma"], width) for q in params])
    beta = jnp.stack([_pad_row(q["beta"], width) for q in params])

    kernel = _make_kernel(1.0 / float(n))

    full = lambda l: (0, 0)            # same block every layer -> DMA'd once
    per_layer = lambda l: (l, 0, 0)    # walk the stacked-parameter layer axis

    z_slab, g_slab = pl.pallas_call(
        kernel,
        grid=(num_layers,),
        in_specs=[
            pl.BlockSpec((n_pad, n_pad), full),            # A
            pl.BlockSpec((g_pad, n_pad), full),            # P
            pl.BlockSpec((n_pad, 1), full),                # node mask
            pl.BlockSpec((n_pad, width), full),            # x (padded)
            pl.BlockSpec((1, width, width), per_layer),    # W1
            pl.BlockSpec((1, 1, width), per_layer),        # b1
            pl.BlockSpec((1, width, width), per_layer),    # W2
            pl.BlockSpec((1, 1, width), per_layer),        # b2
            pl.BlockSpec((1, 1, width), per_layer),        # gamma
            pl.BlockSpec((1, 1, width), per_layer),        # beta
        ],
        out_specs=[
            pl.BlockSpec((n_pad, width), lambda l: (0, l)),   # z slab [N_pad, L*W]
            pl.BlockSpec((g_pad, width), lambda l: (0, l)),   # g slab [G_pad, L*W]
        ],
        out_shape=[
            jax.ShapeDtypeStruct((n_pad, num_layers * width), jnp.float32),
            jax.ShapeDtypeStruct((g_pad, num_layers * width), jnp.float32),
        ],
        scratch_shapes=[pltpu.VMEM((n_pad, width), jnp.float32)],  # carried z
        compiler_params=pltpu.CompilerParams(
            dimension_semantics=("arbitrary",),   # z carries across the layer axis
            vmem_limit_bytes=64 * 1024 * 1024,
        ),
        # TODO(synk): for large N, additionally tile A over node-row blocks
        # (grid=(L, N//tn), "arbitrary"+"parallel") with sum/sum-of-squares
        # accumulators for BatchNorm so the [N, N] adjacency never has to be
        # fully VMEM-resident (needed for v7x's 64 MiB VMEM / 2 TensorCores).
    )(a, p, mask, xp, w1, b1, w2, b2, gamma, beta)

    # Strip padding; the "concatenation" was built in place by the kernel.
    z_cat = z_slab[:n].reshape(n, num_layers, width)[:, :, :hidden]
    z_cat = z_cat.reshape(n, num_layers * hidden)
    g_cat = g_slab[:num_graphs].reshape(num_graphs, num_layers, width)[:, :, :hidden]
    g_cat = g_cat.reshape(num_graphs, num_layers * hidden)
    return z_cat, g_cat


def init_params(key, input_dim, hidden_dim, num_layers):
    params = []
    for i in range(num_layers):
        d_in = input_dim if i == 0 else hidden_dim
        key, k1, k2, k3, k4 = jax.random.split(key, 5)
        s1 = 1.0 / jnp.sqrt(d_in)
        s2 = 1.0 / jnp.sqrt(hidden_dim)
        params.append({
            # Linear weights stored as (in, out): y = x @ W + b
            "w1": jax.random.uniform(k1, (d_in, hidden_dim), jnp.float32, -s1, s1),
            "b1": jax.random.uniform(k2, (1, hidden_dim), jnp.float32, -s1, s1),
            "w2": jax.random.uniform(k3, (hidden_dim, hidden_dim), jnp.float32, -s2, s2),
            "b2": jax.random.uniform(k4, (1, hidden_dim), jnp.float32, -s2, s2),
            # BatchNorm1d default affine init (running stats not tracked here)
            "gamma": jnp.ones((1, hidden_dim), jnp.float32),
            "beta": jnp.zeros((1, hidden_dim), jnp.float32),
        })
    return params


if __name__ == "__main__":
    input_dim, hidden_dim, num_layers = 8, 32, 2
    num_nodes, num_edges, num_graphs = 16, 40, 2

    key = jax.random.PRNGKey(0)
    kx, ke, kp = jax.random.split(key, 3)

    x = jax.random.normal(kx, (num_nodes, input_dim), jnp.float32)
    edge_index = jax.random.randint(ke, (2, num_edges), 0, num_nodes, jnp.int32)
    batch = jnp.concatenate([
        jnp.zeros(num_nodes // 2, jnp.int32),
        jnp.ones(num_nodes - num_nodes // 2, jnp.int32),
    ])

    params = init_params(kp, input_dim, hidden_dim, num_layers)

    z, g = gconv_forward(params, x, edge_index, batch, num_graphs)
    jax.block_until_ready((z, g))

    assert z.shape == (num_nodes, hidden_dim * num_layers)
    assert g.shape == (num_graphs, hidden_dim * num_layers)
    assert bool(jnp.all(jnp.isfinite(z))) and bool(jnp.all(jnp.isfinite(g)))
    print("KERNEL_OK")
</pallas_src>

<mosaic_0001>
module attributes {stable_mosaic.version = 11 : i64} {
  func.func @kernel(%arg0: i32, %arg1: memref<16x16xbf16, #tpu.memory_space<vmem>>, %arg2: memref<8x16xf32, #tpu.memory_space<vmem>>, %arg3: memref<16x1xf32, #tpu.memory_space<vmem>>, %arg4: memref<16x128xf32, #tpu.memory_space<vmem>>, %arg5: memref<1x128x128xbf16, #tpu.memory_space<vmem>>, %arg6: memref<1x1x128xf32, #tpu.memory_space<vmem>>, %arg7: memref<1x128x128xbf16, #tpu.memory_space<vmem>>, %arg8: memref<1x1x128xf32, #tpu.memory_space<vmem>>, %arg9: memref<1x1x128xf32, #tpu.memory_space<vmem>>, %arg10: memref<1x1x128xf32, #tpu.memory_space<vmem>>, %arg11: memref<16x128xf32, #tpu.memory_space<vmem>>, %arg12: memref<8x128xf32, #tpu.memory_space<vmem>>, %arg13: memref<16x128xf32, #tpu.memory_space<vmem>>) attributes {dimension_semantics = [#tpu.dimension_semantics<arbitrary>], iteration_bounds = array<i64: 2>, scalar_prefetch = 0 : i64, scratch_operands = 1 : i64, tpu.core_type = #tpu.core_type<tc>, window_params = [{pipeline_mode = #tpu.pipeline_mode<synchronous>, transform_indices = @transform_0, window_bounds = array<i64: 16, 16>}, {pipeline_mode = #tpu.pipeline_mode<synchronous>, transform_indices = @transform_1, window_bounds = array<i64: 8, 16>}, {pipeline_mode = #tpu.pipeline_mode<synchronous>, transform_indices = @transform_2, window_bounds = array<i64: 16, 1>}, {pipeline_mode = #tpu.pipeline_mode<synchronous>, transform_indices = @transform_3, window_bounds = array<i64: 16, 128>}, {transform_indices = @transform_4, window_bounds = array<i64: 1, 128, 128>}, {transform_indices = @transform_5, window_bounds = array<i64: 1, 1, 128>}, {transform_indices = @transform_6, window_bounds = array<i64: 1, 128, 128>}, {transform_indices = @transform_7, window_bounds = array<i64: 1, 1, 128>}, {transform_indices = @transform_8, window_bounds = array<i64: 1, 1, 128>}, {transform_indices = @transform_9, window_bounds = array<i64: 1, 1, 128>}, {transform_indices = @transform_10, window_bounds = array<i64: 16, 128>}, {transform_indices = @transform_11, window_bounds = array<i64: 8, 128>}]} {
    %c0_i32 = arith.constant 0 : i32
    %0 = arith.cmpi eq, %arg0, %c0_i32 : i32
    %1 = arith.extui %0 : i1 to i32
    %c0_i32_0 = arith.constant 0 : i32
    %2 = arith.cmpi ne, %1, %c0_i32_0 : i32
    scf.if %2 {
      %c0_43 = arith.constant 0 : index
      %c0_44 = arith.constant 0 : index
      %64 = vector.load %arg4[%c0_43, %c0_44] : memref<16x128xf32, #tpu.memory_space<vmem>>, vector<16x128xf32>
      %c0_45 = arith.constant 0 : index
      %c0_46 = arith.constant 0 : index
      %65 = vector.load %arg13[%c0_45, %c0_46] : memref<16x128xf32, #tpu.memory_space<vmem>>, vector<16x128xf32>
      tpu.vector_store %arg13[%c0_45, %c0_46], %64 {strides = array<i32>} : memref<16x128xf32, #tpu.memory_space<vmem>>, vector<16x128xf32>,
    } else {
    }
    %c0 = arith.constant 0 : index
    %c0_1 = arith.constant 0 : index
    %3 = vector.load %arg13[%c0, %c0_1] : memref<16x128xf32, #tpu.memory_space<vmem>>, vector<16x128xf32>
    %c0_2 = arith.constant 0 : index
    %c0_3 = arith.constant 0 : index
    %4 = vector.load %arg1[%c0_2, %c0_3] : memref<16x16xbf16, #tpu.memory_space<vmem>>, vector<16x16xbf16>
    %5 = arith.truncf %3 : vector<16x128xf32> to vector<16x128xbf16>
    %cst = arith.constant dense<0.000000e+00> : vector<16x128xf32>
    %6 = tpu.matmul %4, %5, %cst {dimension_numbers = #tpu.dot_dimension_numbers<[1], [0], [0], [1], [0, 0, 1, 1], [], []>} : vector<16x16xbf16>, vector<16x128xbf16>, vector<16x128xf32> -> vector<16x128xf32>
    %7 = arith.addf %6, %3 : vector<16x128xf32>
    %8 = arith.truncf %7 : vector<16x128xf32> to vector<16x128xbf16>
    %c0_4 = arith.constant 0 : index
    %c0_5 = arith.constant 0 : index
    %c0_6 = arith.constant 0 : index
    %9 = vector.load %arg5[%c0_4, %c0_5, %c0_6] : memref<1x128x128xbf16, #tpu.memory_space<vmem>>, vector<1x128x128xbf16>
    %10 = vector.shape_cast %9 : vector<1x128x128xbf16> to vector<128x128xbf16>
    %cst_7 = arith.constant dense<0.000000e+00> : vector<16x128xf32>
    %11 = tpu.matmul %8, %10, %cst_7 {dimension_numbers = #tpu.dot_dimension_numbers<[1], [0], [0], [1], [0, 0, 1, 1], [], []>} : vector<16x128xbf16>, vector<128x128xbf16>, vector<16x128xf32> -> vector<16x128xf32>
    %c0_8 = arith.constant 0 : index
    %c0_9 = arith.constant 0 : index
    %c0_10 = arith.constant 0 : index
    %12 = vector.load %arg6[%c0_8, %c0_9, %c0_10] : memref<1x1x128xf32, #tpu.memory_space<vmem>>, vector<1x1x128xf32>
    %13 = vector.shape_cast %12 : vector<1x1x128xf32> to vector<1x128xf32>
    %14 = vector.broadcast %13 : vector<1x128xf32> to vector<16x128xf32>
    %15 = arith.addf %11, %14 : vector<16x128xf32>
    %cst_11 = arith.constant 0.000000e+00 : f32
    %16 = vector.broadcast %cst_11 : f32 to vector<16x128xf32>
    %17 = arith.maximumf %15, %16 : vector<16x128xf32>
    %18 = arith.truncf %17 : vector<16x128xf32> to vector<16x128xbf16>
    %c0_12 = arith.constant 0 : index
    %c0_13 = arith.constant 0 : index
    %c0_14 = arith.constant 0 : index
    %19 = vector.load %arg7[%c0_12, %c0_13, %c0_14] : memref<1x128x128xbf16, #tpu.memory_space<vmem>>, vector<1x128x128xbf16>
    %20 = vector.shape_cast %19 : vector<1x128x128xbf16> to vector<128x128xbf16>
    %cst_15 = arith.constant dense<0.000000e+00> : vector<16x128xf32>
    %21 = tpu.matmul %18, %20, %cst_15 {dimension_numbers = #tpu.dot_dimension_numbers<[1], [0], [0], [1], [0, 0, 1, 1], [], []>} : vector<16x128xbf16>, vector<128x128xbf16>, vector<16x128xf32> -> vector<16x128xf32>
    %c0_16 = arith.constant 0 : index
    %c0_17 = arith.constant 0 : index
    %c0_18 = arith.constant 0 : index
    %22 = vector.load %arg8[%c0_16, %c0_17, %c0_18] : memref<1x1x128xf32, #tpu.memory_space<vmem>>, vector<1x1x128xf32>
    %23 = vector.shape_cast %22 : vector<1x1x128xf32> to vector<1x128xf32>
    %24 = vector.broadcast %23 : vector<1x128xf32> to vector<16x128xf32>
    %25 = arith.addf %21, %24 : vector<16x128xf32>
    %cst_19 = arith.constant 0.000000e+00 : f32
    %26 = vector.broadcast %cst_19 : f32 to vector<16x128xf32>
    %27 = arith.maximumf %25, %26 : vector<16x128xf32>
    %c0_20 = arith.constant 0 : index
    %c0_21 = arith.constant 0 : index
    %28 = vector.load %arg3[%c0_20, %c0_21] : memref<16x1xf32, #tpu.memory_space<vmem>>, vector<16x1xf32>
    %29 = vector.broadcast %28 : vector<16x1xf32> to vector<16x128xf32>
    %30 = arith.mulf %27, %29 : vector<16x128xf32>
    %cst_22 = arith.constant dense<0.000000e+00> : vector<128xf32>
    %31 = vector.multi_reduction <add>, %30, %cst_22 [0] : vector<16x128xf32> to vector<128xf32>
    %32 = vector.shape_cast %31 : vector<128xf32> to vector<1x128xf32>
    %33 = arith.mulf %30, %27 : vector<16x128xf32>
    %cst_23 = arith.constant dense<0.000000e+00> : vector<128xf32>
    %34 = vector.multi_reduction <add>, %33, %cst_23 [0] : vector<16x128xf32> to vector<128xf32>
    %35 = vector.shape_cast %34 : vector<128xf32> to vector<1x128xf32>
    %cst_24 = arith.constant 6.250000e-02 : f32
    %36 = vector.broadcast %cst_24 : f32 to vector<1x128xf32>
    %37 = arith.mulf %32, %36 : vector<1x128xf32>
    %cst_25 = arith.constant 6.250000e-02 : f32
    %38 = vector.broadcast %cst_25 : f32 to vector<1x128xf32>
    %39 = arith.mulf %35, %38 : vector<1x128xf32>
    %40 = arith.mulf %37, %37 : vector<1x128xf32>
    %41 = arith.subf %39, %40 : vector<1x128xf32>
    %cst_26 = arith.constant 0.000000e+00 : f32
    %42 = vector.broadcast %cst_26 : f32 to vector<1x128xf32>
    %43 = arith.maximumf %41, %42 : vector<1x128xf32>
    %44 = vector.broadcast %37 : vector<1x128xf32> to vector<16x128xf32>
    %45 = arith.subf %27, %44 : vector<16x128xf32>
    %cst_27 = arith.constant 9.99999974E-6 : f32
    %46 = vector.broadcast %cst_27 : f32 to vector<1x128xf32>
    %47 = arith.addf %43, %46 : vector<1x128xf32>
    %48 = math.rsqrt %47 : vector<1x128xf32>
    %49 = vector.broadcast %48 : vector<1x128xf32> to vector<16x128xf32>
    %50 = arith.mulf %45, %49 : vector<16x128xf32>
    %c0_28 = arith.constant 0 : index
    %c0_29 = arith.constant 0 : index
    %c0_30 = arith.constant 0 : index
    %51 = vector.load %arg9[%c0_28, %c0_29, %c0_30] : memref<1x1x128xf32, #tpu.memory_space<vmem>>, vector<1x1x128xf32>
    %52 = vector.shape_cast %51 : vector<1x1x128xf32> to vector<1x128xf32>
    %53 = vector.broadcast %52 : vector<1x128xf32> to vector<16x128xf32>
    %54 = arith.mulf %50, %53 : vector<16x128xf32>
    %c0_31 = arith.constant 0 : index
    %c0_32 = arith.constant 0 : index
    %c0_33 = arith.constant 0 : index
    %55 = vector.load %arg10[%c0_31, %c0_32, %c0_33] : memref<1x1x128xf32, #tpu.memory_space<vmem>>, vector<1x1x128xf32>
    %56 = vector.shape_cast %55 : vector<1x1x128xf32> to vector<1x128xf32>
    %57 = vector.broadcast %56 : vector<1x128xf32> to vector<16x128xf32>
    %58 = arith.addf %54, %57 : vector<16x128xf32>
    %c0_34 = arith.constant 0 : index
    %c0_35 = arith.constant 0 : index
    %59 = vector.load %arg13[%c0_34, %c0_35] : memref<16x128xf32, #tpu.memory_space<vmem>>, vector<16x128xf32>
    tpu.vector_store %arg13[%c0_34, %c0_35], %58 {strides = array<i32>} : memref<16x128xf32, #tpu.memory_space<vmem>>, vector<16x128xf32>,
    %c0_36 = arith.constant 0 : index
    %c0_37 = arith.constant 0 : index
    %60 = vector.load %arg11[%c0_36, %c0_37] : memref<16x128xf32, #tpu.memory_space<vmem>>, vector<16x128xf32>
    tpu.vector_store %arg11[%c0_36, %c0_37], %58 {strides = array<i32>} : memref<16x128xf32, #tpu.memory_space<vmem>>, vector<16x128xf32>,
    %c0_38 = arith.constant 0 : index
    %c0_39 = arith.constant 0 : index
    %61 = vector.load %arg2[%c0_38, %c0_39] : memref<8x16xf32, #tpu.memory_space<vmem>>, vector<8x16xf32>
    %cst_40 = arith.constant dense<0.000000e+00> : vector<8x128xf32>
    %62 = tpu.matmul %61, %58, %cst_40 {dimension_numbers = #tpu.dot_dimension_numbers<[1], [0], [0], [1], [0, 0, 1, 1], [], []>} : vector<8x16xf32>, vector<16x128xf32>, vector<8x128xf32> -> vector<8x128xf32>
    %c0_41 = arith.constant 0 : index
    %c0_42 = arith.constant 0 : index
    %63 = vector.load %arg12[%c0_41, %c0_42] : memref<8x128xf32, #tpu.memory_space<vmem>>, vector<8x128xf32>
    tpu.vector_store %arg12[%c0_41, %c0_42], %62 {strides = array<i32>} : memref<8x128xf32, #tpu.memory_space<vmem>>, vector<8x128xf32>,
    return
  }
  func.func @transform_0(%arg0: i32) -> (i32, i32) {
    %c0_i32 = arith.constant 0 : i32
    %c0_i32_0 = arith.constant 0 : i32
    %c0_i32_1 = arith.constant 0 : i32
    return %c0_i32, %c0_i32_0 : i32, i32
  }
  func.func @transform_1(%arg0: i32) -> (i32, i32) {
    %c0_i32 = arith.constant 0 : i32
    %c0_i32_0 = arith.constant 0 : i32
    %c0_i32_1 = arith.constant 0 : i32
    return %c0_i32, %c0_i32_0 : i32, i32
  }
  func.func @transform_2(%arg0: i32) -> (i32, i32) {
    %c0_i32 = arith.constant 0 : i32
    %c0_i32_0 = arith.constant 0 : i32
    %c0_i32_1 = arith.constant 0 : i32
    return %c0_i32, %c0_i32_0 : i32, i32
  }
  func.func @transform_3(%arg0: i32) -> (i32, i32) {
    %c0_i32 = arith.constant 0 : i32
    %c0_i32_0 = arith.constant 0 : i32
    %c0_i32_1 = arith.constant 0 : i32
    return %c0_i32, %c0_i32_0 : i32, i32
  }
  func.func @transform_4(%arg0: i32) -> (i32, i32, i32) {
    %c0_i32 = arith.constant 0 : i32
    %c0_i32_0 = arith.constant 0 : i32
    %c0_i32_1 = arith.constant 0 : i32
    return %arg0, %c0_i32, %c0_i32_0 : i32, i32, i32
  }
  func.func @transform_5(%arg0: i32) -> (i32, i32, i32) {
    %c0_i32 = arith.constant 0 : i32
    %c0_i32_0 = arith.constant 0 : i32
    %c0_i32_1 = arith.constant 0 : i32
    return %arg0, %c0_i32, %c0_i32_0 : i32, i32, i32
  }
  func.func @transform_6(%arg0: i32) -> (i32, i32, i32) {
    %c0_i32 = arith.constant 0 : i32
    %c0_i32_0 = arith.constant 0 : i32
    %c0_i32_1 = arith.constant 0 : i32
    return %arg0, %c0_i32, %c0_i32_0 : i32, i32, i32
  }
  func.func @transform_7(%arg0: i32) -> (i32, i32, i32) {
    %c0_i32 = arith.constant 0 : i32
    %c0_i32_0 = arith.constant 0 : i32
    %c0_i32_1 = arith.constant 0 : i32
    return %arg0, %c0_i32, %c0_i32_0 : i32, i32, i32
  }
  func.func @transform_8(%arg0: i32) -> (i32, i32, i32) {
    %c0_i32 = arith.constant 0 : i32
    %c0_i32_0 = arith.constant 0 : i32
    %c0_i32_1 = arith.constant 0 : i32
    return %arg0, %c0_i32, %c0_i32_0 : i32, i32, i32
  }
  func.func @transform_9(%arg0: i32) -> (i32, i32, i32) {
    %c0_i32 = arith.constant 0 : i32
    %c0_i32_0 = arith.constant 0 : i32
    %c0_i32_1 = arith.constant 0 : i32
    return %arg0, %c0_i32, %c0_i32_0 : i32, i32, i32
  }
  func.func @transform_10(%arg0: i32) -> (i32, i32) {
    %c0_i32 = arith.constant 0 : i32
    %c0_i32_0 = arith.constant 0 : i32
    return %c0_i32, %arg0 : i32, i32
  }
  func.func @transform_11(%arg0: i32) -> (i32, i32) {
    %c0_i32 = arith.constant 0 : i32
    %c0_i32_0 = arith.constant 0 : i32
    return %c0_i32, %arg0 : i32, i32
  }
}

</mosaic_0001>

<bundles_post_ra>
// kernel: tpu_custom_call.1
= control target key start
LH: loop header
LB: loop body
LE: loop exit
PB: predicated region body
PF: predicated region fallthrough
CT: control target
= control target key end

     0   :  { %s2627_s0 = inlined_call_operand.hbm [shape: bf16[16,16], index: 0, kind: input, shape index: {}]   ;;  %s2628_s1 = inlined_call_operand.hbm [shape: f32[8,16], index: 1, kind: input, shape index: {}]   ;;  %s2629_s2 = inlined_call_operand.hbm [shape: f32[16,1], index: 2, kind: input, shape index: {}]   ;;  %s2630_s3 = inlined_call_operand.hbm [shape: f32[16,128], index: 3, kind: input, shape index: {}]   ;;  %s2631_s4 = inlined_call_operand.hbm [shape: bf16[2,128,128], index: 4, kind: input, shape index: {}]   ;;  %s2632_s5 = inlined_call_operand.hbm [shape: f32[2,1,128], index: 5, kind: input, shape index: {}]   ;;  %s2633_s6 = inlined_call_operand.hbm [shape: bf16[2,128,128], index: 6, kind: input, shape index: {}]   ;;  %s2634_s7 = inlined_call_operand.hbm [shape: f32[2,1,128], index: 7, kind: input, shape index: {}]   ;;  %s2635_s8 = inlined_call_operand.hbm [shape: f32[2,1,128], index: 8, kind: input, shape index: {}]   ;;  %s2636_s9 = inlined_call_operand.hbm [shape: f32[2,1,128], index: 9, kind: input, shape index: {}]   ;;  %s2637_s10 = inlined_call_operand.hbm [shape: f32[16,256], index: 10, kind: output, shape index: {0}]   ;;  %s2638_s11 = inlined_call_operand.hbm [shape: f32[8,256], index: 11, kind: output, shape index: {1}]  }
   0x1   :  { %2672 = sst [smem:[#allocation35_spill]] %s2627_s0 }
   0x2   :  { %2673 = sst [smem:[#allocation36_spill]] %s2628_s1 }
   0x3   :  { %2674 = sst [smem:[#allocation37_spill]] %s2631_s4 }
   0x4   :  { %2675 = sst [smem:[#allocation38_spill]] %s2632_s5 }
   0x5   :  { %2676 = sst [smem:[#allocation39_spill]] %s2633_s6 }
   0x6   :  { %2677 = sst [smem:[#allocation40_spill]] %s2637_s10 }
   0x7   :  { %2678 = sst [smem:[#allocation41_spill]] %s2638_s11 }
   0x8   :  { %17 = vsyncpa [#allocation4], 0 }
   0x9   :  { %18 = vsyncpa [#allocation7], 0 }
   0xa   :  { %19 = vsyncpa [#allocation10], 0 }
   0xb   :  { %20 = vsyncpa [#allocation5], 0 }
   0xc   :  { %22 = vsyncpa [#allocation5 + $0x1], 0 }
   0xd   :  { %23 = vsyncpa [#allocation19], 0 }
   0xe   :  { %25 = vsyncpa [#allocation19 + $0x1], 0  ;;  %s2097_s17 = smov 0   ;;  %s2099_s18 = smov 0  }
   0xf   :  { %s2101_s19 = smov 0   ;;  %s2103_s20 = smov 0  }
  0x10 LB: > { %2679 = sst [smem:[#allocation26_spill]] %s2000_s17  ;;  %s2118_s21 = sadd.s32 4294967295, %s2012_s20   ;;  %s2012_s20 = sphi %s2103_s20, %s2738_s20   ;;  %s2008_s19 = sphi %s2101_s19, %s2741_s19   ;;  %s2004_s18 = sphi %s2099_s18, %s2740_s18   ;;  %s2000_s17 = sphi %s2097_s17, %s2739_s17  }
  0x11   : > { %2680 = sst [smem:[#allocation27_spill]] %s2004_s18  ;;  %s1325_s22 = sadd.s32 4294967294, %s2012_s20  }
  0x12   : > { %2681 = sst [smem:[#allocation28_spill]] %s2008_s19  ;;  %s2122_s23 = sadd.s32 1, %s2012_s20  }
  0x13   : > { %2682 = sst [smem:[#allocation29_spill]] %s2012_s20  ;;  %s122_s24 = sadd.s32 1, %s2008_s19 }
  0x14   : > { %2683 = sst [smem:[#allocation30_spill]] %s2122_s23  ;;  %s119_s25 = ssub.s32 %s2012_s20, %s2122_s23 }
  0x15   : > { %p129_p0 = scmp.ne.s32.totalorder %s2008_s19, %s2004_s18  ;;  %p120_p1 = scmp.eq.s32.totalorder %s119_s25, 0 }
  0x16   : > { %p130_p2 = scmp.eq.s32.totalorder %s2012_s20, 0  ;;  %p135_p3 = scmp.ne.s32.totalorder %s2004_s18, %s2000_s17 }
  0x17   : > { %p2643_p4 = scmp.eq.s32.totalorder %s2118_s21, 0  ;;  %p289_p7 = scmp.eq.s32.totalorder %s2118_s21, 1 }
  0x18   : > { %s2134_s26 = scalar_select %p120_p1, %s2008_s19, %s122_s24  }
  0x19   : > { %p2136_p5 = por %p130_p2, %p129_p0  ;;  %p2142_p6 = por %p2643_p4, %p135_p3 }
  0x1a   : > { %2684 = sst [smem:[#allocation31_spill]] %s2134_s26  ;;  %p295_p8 = scmp.eq.s32.totalorder %s1325_s22, 1 }
  0x1b   : > { %s2685_s27 = scalar_select %p2136_p5, 1, 0 }
  0x1c   : > { %s2686_s28 = scalar_select %p2142_p6, 1, 0 }
  0x1d   : > { %p1326_p9 = scmp.ge.s32.totalorder %s2012_s20, 1  ;;  %p328_p10 = scmp.lt.s32.totalorder %s2012_s20, 3 }
  0x1e   : > { %2687 = sst [smem:[#allocation32_spill]] %s2686_s28  ;;  %p2149_p11 = por %p289_p7, %p129_p0 }
  0x1f   : > { %p2153_p12 = por %p295_p8, %p135_p3  ;;  %p2157_p13 = pnand %p1326_p9, %p328_p10 }
  0x20   : > { %s2688_s29 = scalar_select %p2149_p11, 1, 0 }
  0x21   : > { %s2690_s30 = scalar_select %p2153_p12, 1, 0 }
  0x22   : > { %2689 = sst [smem:[#allocation33_spill]] %s2688_s29  ;;  %p1494_p2 = pneg %p2157_p13 }
  0x23   : > { %2691 = sst [smem:[#allocation34_spill]] %s2690_s30  ;;  %s2014_s13 = smov [#allocation3]  }
  0x24   : > { %s2692_s12 = scalar_select %p2157_p13, 1, 0 }
  0x25   : > { %s340_s14 = sshll.u32 %s2014_s13, 4  ;;  %p2166_p0 = pnand %p1494_p2, %p2643_p4  ;;  %s341_s14 = int_to_ptr.vmem [resolvable:$true] %s340_s14 }
  0x26   : > { %s391_s16 = sand.u32 1, %s2012_s20   ;;  %s2694_s0 = sld [smem:[#allocation35_spill]] }
  0x27   : > { %s2693_s15 = scalar_select %p2166_p0, 1, 0 }
  0x28   : > { %p2181_p9 = pneg %p2166_p0 }
  0x2a   : > { %s2695_s13 = scalar_select %p2181_p9, 1, 0 }
  0x2c   : > { %s1610_s25 = scalar_lea.hbm %s2694_s0, 128 }
  0x2d   : > { %p1611_p8 = scmp.ne.s32.totalorder %s2694_s0, %s1610_s25  ;;  %p1617_p3 = scmp.lt.u32.totalorder %s1610_s25, %s2694_s0 }
  0x2f   : > { %p1613_p10 = pnand %p2181_p9, %p1611_p8 }
  0x31   : > { %p1614_p2 = pneg %p1613_p10 }
  0x33   : > { %p1619_p1 = pnand %p1617_p3, %p1614_p2 }
  0x35   : > { %1622 = shalt.err (!%p1619_p1)
}
  0x36   : > { %s1623_s22 = scalar_lea.vmem %s341_s14, 128  ;;  %p1631_p11 = scmp.lt.s32.totalorder %s341_s14, %s341_s14 }
  0x37   : > { %p1624_p4 = scmp.ne.s32.totalorder %s341_s14, %s1623_s22  ;;  %p1632_p6 = scmp.lt.s32.totalorder %s1623_s22, %s1623_s22 }
  0x39   : > { %p1626_p7 = pnand %p1624_p4, %p2181_p9  ;;  %p1633_p13 = por %p1632_p6, %p1631_p11 }
  0x3b   : > { %p1627_p12 = pneg %p1626_p7 }
  0x3d   : > { %p1634_p5 = pnand %p1633_p13, %p1627_p12 }
  0x3f   : > { %1637 = shalt.err (!%p1634_p5)
}
  0x40   : > { %s2651_s23 = smov 64   ;;  %s2655_s17 = smov 4  }
  0x41   : > { %1497 = dma.hbm_to_vmem [thread:$0]  (!%p2166_p0), %s2694_s0, 128, %s341_s14, [#allocation4], %s2651_s23, %s2651_s23, %s2655_s17  }
  0x42   : > { %s2201_s24 = sand.u32 1, %s2008_s19   ;;  %s2653_s25 = sshll.u32 %s2012_s20, 10 }
  0x43   : > { %s2654_s22 = sshll.u32 %s2201_s24, 6  ;;  %s2696_s4 = sld [smem:[#allocation37_spill]] }
  0x44   : > { %p2697_p4 = scmp.ne.s32.totalorder %s2685_s27, 0  ;;  %p2698_p5 = scmp.lt.s32.totalorder %s2012_s20, 2 }
  0x45   : > { %s395_s26 = scalar_lea.vmem [#allocation11], %s2654_s22  ;;  %s2224_s23 = scalar_lea.sflag [#allocation4], %s391_s16 }
  0x46   : > { %p2216_p6 = pnand %p2698_p5, %p2697_p4  ;;  %s402_s30 = sshll.u32 %s395_s26, 4  ;;  %s2222_s30 = int_to_ptr.vmem [resolvable:$true] %s402_s30 }
  0x48   : > { %s2699_s14 = scalar_select %p2216_p6, 1, 0 }
  0x49   : > { %s2210_s29 = scalar_lea.hbm %s2696_s4, %s2653_s25  ;;  %p2230_p12 = pneg %p2216_p6 }
  0x4a   : > { %s1638_s10 = scalar_lea.hbm %s2210_s29, 1024  ;;  %s1643_s22 = scalar_lea.hbm %s2696_s4, 2048 }
  0x4b   : > { %p1639_p11 = scmp.ne.s32.totalorder %s2210_s29, %s1638_s10  ;;  %p1644_p3 = scmp.lt.u32.totalorder %s2210_s29, %s2696_s4 }
  0x4c   : > { %s2700_s11 = scalar_select %p2230_p12, 1, 0 }
  0x4d   : > { %p1641_p13 = pnand %p2230_p12, %p1639_p11  ;;  %p1645_p7 = scmp.lt.u32.totalorder %s1643_s22, %s1638_s10 }
  0x4e   : > { %p1647_p10 = scmp.lt.u32.totalorder %s1638_s10, %s2210_s29 }
  0x4f   : > { %p1642_p1 = pneg %p1641_p13  ;;  %p1646_p8 = por %p1645_p7, %p1644_p3 }
  0x51   : > { %p1648_p2 = por %p1647_p10, %p1646_p8 }
  0x53   : > { %p1649_p4 = pnand %p1648_p2, %p1642_p1 }
  0x55   : > { %1652 = shalt.err (!%p1649_p4)
}
  0x56   : > { %s1653_s16 = scalar_lea.vmem %s2222_s30, 1024  ;;  %s2017_s25 = smov [#allocation11]  }
  0x57   : > { %p1654_p5 = scmp.ne.s32.totalorder %s2222_s30, %s1653_s16  ;;  %s1658_s27 = sshll.u32 %s2017_s25, 4  ;;  %s1659_s27 = int_to_ptr.vmem [resolvable:$false] %s1658_s27 }
  0x58   : > { %s1660_s17 = scalar_lea.vmem %s1659_s27, 2048  ;;  %p1661_p0 = scmp.lt.s32.totalorder %s2222_s30, %s1659_s27 }
  0x59   : > { %p1656_p11 = pnand %p1654_p5, %p2230_p12  ;;  %p1662_p9 = scmp.lt.s32.totalorder %s1660_s17, %s1653_s16 }
  0x5b   : > { %p1657_p13 = pneg %p1656_p11  ;;  %p1663_p3 = por %p1662_p9, %p1661_p0 }
  0x5d   : > { %p1664_p7 = pnand %p1663_p3, %p1657_p13 }
  0x5f   : > { %1667 = shalt.err (!%p1664_p7)
}
  0x60   : > { %s2701_s22 = smov 4   ;;  %s2702_s10 = smov 64  }
  0x61   : > { %1510 = dma.hbm_to_vmem [thread:$0]  (!%p2216_p6), %s2210_s29, 1024, %s2222_s30, %s2224_s23, %s2702_s10, %s2702_s10, %s2701_s22  }
  0x62   : > { %s2258_s26 = sshll.u32 %s2012_s20, 4  ;;  %s415_s25 = scalar_lea.vmem [#allocation12], %s2201_s24 }
  0x63   : > { %s422_s16 = sshll.u32 %s415_s25, 4  ;;  %s2703_s5 = sld [smem:[#allocation38_spill]]  ;;  %s423_s16 = int_to_ptr.vmem [resolvable:$true] %s422_s16 }
  0x69   : > { %s420_s0 = scalar_lea.hbm %s2703_s5, %s2258_s26  ;;  %s1673_s18 = scalar_lea.hbm %s2703_s5, 32 }
  0x6a   : > { %s1668_s4 = scalar_lea.hbm %s420_s0, 16  ;;  %p1674_p8 = scmp.lt.u32.totalorder %s420_s0, %s2703_s5 }
  0x6b   : > { %p1669_p0 = scmp.ne.s32.totalorder %s420_s0, %s1668_s4  ;;  %p1675_p10 = scmp.lt.u32.totalorder %s1673_s18, %s1668_s4 }
  0x6c   : > { %p1677_p4 = scmp.lt.u32.totalorder %s1668_s4, %s420_s0 }
  0x6d   : > { %p1671_p9 = pnand %p1669_p0, %p2230_p12  ;;  %p1676_p2 = por %p1675_p10, %p1674_p8 }
  0x6f   : > { %p1672_p1 = pneg %p1671_p9  ;;  %p1678_p5 = por %p1677_p4, %p1676_p2 }
  0x71   : > { %p1679_p11 = pnand %p1678_p5, %p1672_p1 }
  0x73   : > { %1682 = shalt.err (!%p1679_p11)
}
  0x74   : > { %s1683_s25 = scalar_lea.vmem %s423_s16, 16  ;;  %s2018_s27 = smov [#allocation12]  }
  0x75   : > { %p1684_p13 = scmp.ne.s32.totalorder %s423_s16, %s1683_s25  ;;  %s1688_s17 = sshll.u32 %s2018_s27, 4  ;;  %s1689_s17 = int_to_ptr.vmem [resolvable:$false] %s1688_s17 }
  0x76   : > { %s1690_s19 = scalar_lea.vmem %s1689_s17, 32  ;;  %p1691_p0 = scmp.lt.s32.totalorder %s423_s16, %s1689_s17 }
  0x77   : > { %p1686_p3 = pnand %p1684_p13, %p2230_p12  ;;  %p1692_p9 = scmp.lt.s32.totalorder %s1690_s19, %s1683_s25 }
  0x79   : > { %p1687_p7 = pneg %p1686_p3  ;;  %p1693_p6 = por %p1692_p9, %p1691_p0 }
  0x7b   : > { %p1694_p8 = pnand %p1693_p6, %p1687_p7 }
  0x7d   : > { %1697 = shalt.err (!%p1694_p8)
}
  0x7e   : > { %p2704_p10 = scmp.ne.s32.totalorder %s2699_s14, 0  ;;  %s2705_s4 = sshll.u32 %s2012_s20, 10 }
  0x7f   : > { %s2706_s6 = sld [smem:[#allocation39_spill]]  ;;  %s2707_s30 = sshll.u32 %s2201_s24, 6 }
  0x80   : > { %1513 = dma.hbm_to_vmem [thread:$0]  (!%p2704_p10), %s420_s0, 16, %s423_s16, %s2224_s23  }
  0x81   : > { %s433_s25 = scalar_lea.vmem [#allocation13], %s2707_s30  ;;  %s2293_s5 = scalar_lea.hbm %s2634_s7, %s2258_s26 }
  0x82   : > { %s440_s27 = sshll.u32 %s433_s25, 4  ;;  %s2287_s27 = int_to_ptr.vmem [resolvable:$true] %s440_s27 }
  0x85   : > { %s2283_s29 = scalar_lea.hbm %s2706_s6, %s2705_s4  ;;  %s1703_s18 = scalar_lea.hbm %s2706_s6, 2048 }
  0x86   : > { %s1698_s0 = scalar_lea.hbm %s2283_s29, 1024  ;;  %p1704_p4 = scmp.lt.u32.totalorder %s2283_s29, %s2706_s6 }
  0x87   : > { %p1699_p6 = scmp.ne.s32.totalorder %s2283_s29, %s1698_s0  ;;  %p1705_p5 = scmp.lt.u32.totalorder %s1703_s18, %s1698_s0 }
  0x88   : > { %p1707_p13 = scmp.lt.u32.totalorder %s1698_s0, %s2283_s29 }
  0x89   : > { %p1701_p1 = pnand %p1699_p6, %p2230_p12  ;;  %p1706_p11 = por %p1705_p5, %p1704_p4 }
  0x8b   : > { %p1702_p2 = pneg %p1701_p1  ;;  %p1708_p3 = por %p1707_p13, %p1706_p11 }
  0x8d   : > { %p1709_p7 = pnand %p1708_p3, %p1702_p2 }
  0x8f   : > { %1712 = shalt.err (!%p1709_p7)
}
  0x90   : > { %s1713_s30 = scalar_lea.vmem %s2287_s27, 1024  ;;  %s2019_s25 = smov [#allocation13]  }
  0x91   : > { %p1714_p0 = scmp.ne.s32.totalorder %s2287_s27, %s1713_s30  ;;  %s1718_s17 = sshll.u32 %s2019_s25, 4  ;;  %s1719_s17 = int_to_ptr.vmem [resolvable:$false] %s1718_s17 }
  0x92   : > { %s1720_s20 = scalar_lea.vmem %s1719_s17, 2048  ;;  %p1721_p6 = scmp.lt.s32.totalorder %s2287_s27, %s1719_s17 }
  0x93   : > { %p1716_p9 = pnand %p1714_p0, %p2230_p12  ;;  %p1722_p1 = scmp.lt.s32.totalorder %s1720_s20, %s1713_s30 }
  0x95   : > { %p1717_p8 = pneg %p1716_p9  ;;  %p1723_p4 = por %p1722_p1, %p1721_p6 }
  0x97   : > { %p1724_p5 = pnand %p1723_p4, %p1717_p8 }
  0x99   : > { %1727 = shalt.err (!%p1724_p5)
}
  0x9a   : > { %1516 = dma.hbm_to_vmem [thread:$0]  (!%p2704_p10), %s2283_s29, 1024, %s2287_s27, %s2224_s23, %s2702_s10, %s2702_s10, %s2701_s22  }
  0x9b   : > { %s453_s19 = scalar_lea.vmem [#allocation14], %s2201_s24  ;;  %s2020_s16 = smov [#allocation6]  }
  0x9c   : > { %s460_s0 = sshll.u32 %s453_s19, 4  ;;  %s354_s4 = sshll.u32 %s2020_s16, 4  ;;  %s2321_s0 = int_to_ptr.vmem [resolvable:$true] %s460_s0  ;;  %s355_s4 = int_to_ptr.vmem [resolvable:$true] %s354_s4 }
  0x9d   : > { %s1728_s18 = scalar_lea.hbm %s2293_s5, 16  ;;  %s1733_s25 = scalar_lea.hbm %s2634_s7, 32 }
  0x9e   : > { %p1729_p2 = scmp.ne.s32.totalorder %s2293_s5, %s1728_s18  ;;  %p1734_p3 = scmp.lt.u32.totalorder %s2293_s5, %s2634_s7 }
  0x9f   : > { %p1735_p7 = scmp.lt.u32.totalorder %s1733_s25, %s1728_s18  ;;  %p1737_p9 = scmp.lt.u32.totalorder %s1728_s18, %s2293_s5 }
  0xa0   : > { %p1731_p11 = pnand %p1729_p2, %p2230_p12 }
  0xa1   : > { %p1736_p0 = por %p1735_p7, %p1734_p3 }
  0xa2   : > { %p1732_p13 = pneg %p1731_p11 }
  0xa3   : > { %p1738_p8 = por %p1737_p9, %p1736_p0 }
  0xa5   : > { %p1739_p6 = pnand %p1738_p8, %p1732_p13 }
  0xa7   : > { %1742 = shalt.err (!%p1739_p6)
}
  0xa8   : > { %s1743_s22 = scalar_lea.vmem %s2321_s0, 16  ;;  %s2021_s10 = smov [#allocation14]  }
  0xa9   : > { %p1744_p1 = scmp.ne.s32.totalorder %s2321_s0, %s1743_s22  ;;  %s1748_s29 = sshll.u32 %s2021_s10, 4  ;;  %s1749_s29 = int_to_ptr.vmem [resolvable:$false] %s1748_s29 }
  0xaa   : > { %s1750_s27 = scalar_lea.vmem %s1749_s29, 32  ;;  %p1751_p2 = scmp.lt.s32.totalorder %s2321_s0, %s1749_s29 }
  0xab   : > { %p1746_p4 = pnand %p1744_p1, %p2230_p12  ;;  %p1752_p11 = scmp.lt.s32.totalorder %s1750_s27, %s1743_s22 }
  0xad   : > { %p1747_p5 = pneg %p1746_p4  ;;  %p1753_p3 = por %p1752_p11, %p1751_p2 }
  0xaf   : > { %p1754_p7 = pnand %p1753_p3, %p1747_p5 }
  0xb1   : > { %1757 = shalt.err (!%p1754_p7)
}
  0xb2   : > { %1519 = dma.hbm_to_vmem [thread:$0]  (!%p2704_p10), %s2293_s5, 16, %s2321_s0, %s2224_s23  }
  0xb3   : > { %s2708_s1 = sld [smem:[#allocation36_spill]]  ;;  %p2709_p0 = scmp.ne.s32.totalorder %s2695_s13, 0 }
  0xb9   : > { %s1758_s18 = scalar_lea.hbm %s2708_s1, 128 }
  0xba   : > { %p1759_p13 = scmp.ne.s32.totalorder %s2708_s1, %s1758_s18  ;;  %p1765_p6 = scmp.lt.u32.totalorder %s1758_s18, %s2708_s1 }
  0xbc   : > { %p1761_p9 = pnand %p1759_p13, %p2709_p0 }
  0xbe   : > { %p1762_p8 = pneg %p1761_p9 }
  0xc0   : > { %p1767_p1 = pnand %p1765_p6, %p1762_p8 }
  0xc2   : > { %1770 = shalt.err (!%p1767_p1)
}
  0xc3   : > { %s1771_s20 = scalar_lea.vmem %s355_s4, 128  ;;  %p1779_p11 = scmp.lt.s32.totalorder %s355_s4, %s355_s4 }
  0xc4   : > { %p1772_p4 = scmp.ne.s32.totalorder %s355_s4, %s1771_s20  ;;  %p1780_p3 = scmp.lt.s32.totalorder %s1771_s20, %s1771_s20 }
  0xc6   : > { %p1774_p5 = pnand %p1772_p4, %p2709_p0  ;;  %p1781_p7 = por %p1780_p3, %p1779_p11 }
  0xc8   : > { %p1775_p2 = pneg %p1774_p5 }
  0xca   : > { %p1782_p10 = pnand %p1781_p7, %p1775_p2 }
  0xcc   : > { %1785 = shalt.err (!%p1782_p10)
}
  0xcd   : > { %p2710_p13 = scmp.ne.s32.totalorder %s2693_s15, 0  ;;  %s2367_s29 = scalar_lea.hbm %s2635_s8, %s2258_s26 }
  0xce   : > { %s470_s27 = scalar_lea.vmem [#allocation15], %s2201_s24  ;;  %s1786_s16 = scalar_lea.hbm %s2367_s29, 16 }
  0xcf   : > { %1500 = dma.hbm_to_vmem [thread:$0]  (!%p2710_p13), %s2708_s1, 128, %s355_s4, [#allocation7]  }
  0xd0   : > { %s477_s19 = sshll.u32 %s470_s27, 4  ;;  %p1787_p10 = scmp.ne.s32.totalorder %s2367_s29, %s1786_s16  ;;  %s478_s19 = int_to_ptr.vmem [resolvable:$true] %s477_s19 }
  0xd1   : > { %s1791_s4 = scalar_lea.hbm %s2635_s8, 32  ;;  %p1792_p6 = scmp.lt.u32.totalorder %s2367_s29, %s2635_s8 }
  0xd2   : > { %p1789_p9 = pnand %p1787_p10, %p2230_p12  ;;  %p1793_p1 = scmp.lt.u32.totalorder %s1791_s4, %s1786_s16 }
  0xd3   : > { %p1795_p5 = scmp.lt.u32.totalorder %s1786_s16, %s2367_s29 }
  0xd4   : > { %p1790_p8 = pneg %p1789_p9  ;;  %p1794_p4 = por %p1793_p1, %p1792_p6 }
  0xd6   : > { %p1796_p2 = por %p1795_p5, %p1794_p4 }
  0xd8   : > { %p1797_p11 = pnand %p1796_p2, %p1790_p8 }
  0xda   : > { %1800 = shalt.err (!%p1797_p11)
}
  0xdb   : > { %s1801_s17 = scalar_lea.vmem %s478_s19, 16  ;;  %s2022_s20 = smov [#allocation15]  }
  0xdc   : > { %p1802_p3 = scmp.ne.s32.totalorder %s478_s19, %s1801_s17  ;;  %s1806_s5 = sshll.u32 %s2022_s20, 4  ;;  %s1807_s5 = int_to_ptr.vmem [resolvable:$false] %s1806_s5 }
  0xdd   : > { %s1808_s0 = scalar_lea.vmem %s1807_s5, 32  ;;  %p1809_p9 = scmp.lt.s32.totalorder %s478_s19, %s1807_s5 }
  0xde   : > { %p1804_p7 = pnand %p1802_p3, %p2230_p12  ;;  %p1810_p13 = scmp.lt.s32.totalorder %s1808_s0, %s1801_s17 }
  0xe0   : > { %p1805_p10 = pneg %p1804_p7  ;;  %p1811_p0 = por %p1810_p13, %p1809_p9 }
  0xe2   : > { %p1812_p1 = pnand %p1811_p0, %p1805_p10 }
  0xe4   : > { %1815 = shalt.err (!%p1812_p1)
}
  0xe5   : > { %p2711_p6 = scmp.ne.s32.totalorder %s2699_s14, 0  ;;  %s2023_s22 = smov [#allocation8]  }
  0xe6   : > { %s364_s10 = sshll.u32 %s2023_s22, 4  ;;  %s1816_s18 = scalar_lea.hbm %s2629_s2, 256  ;;  %s365_s10 = int_to_ptr.vmem [resolvable:$true] %s364_s10 }
  0xe7   : > { %1522 = dma.hbm_to_vmem [thread:$0]  (!%p2711_p6), %s2367_s29, 16, %s478_s19, %s2224_s23  }
  0xe8   : > { %p1817_p8 = scmp.ne.s32.totalorder %s2629_s2, %s1816_s18  ;;  %p2712_p13 = scmp.ne.s32.totalorder %s2695_s13, 0 }
  0xe9   : > { %p1823_p5 = scmp.lt.u32.totalorder %s1816_s18, %s2629_s2 }
  0xea   : > { %p1819_p0 = pnand %p1817_p8, %p2712_p13 }
  0xec   : > { %p1820_p4 = pneg %p1819_p0 }
  0xee   : > { %p1825_p2 = pnand %p1823_p5, %p1820_p4 }
  0xf0   : > { %1828 = shalt.err (!%p1825_p2)
}
  0xf1   : > { %s1829_s29 = scalar_lea.vmem %s365_s10, 256  ;;  %p1837_p10 = scmp.lt.s32.totalorder %s365_s10, %s365_s10 }
  0xf2   : > { %p1830_p11 = scmp.ne.s32.totalorder %s365_s10, %s1829_s29  ;;  %p1838_p9 = scmp.lt.s32.totalorder %s1829_s29, %s1829_s29 }
  0xf4   : > { %p1832_p3 = pnand %p1830_p11, %p2712_p13  ;;  %p1839_p1 = por %p1838_p9, %p1837_p10 }
  0xf6   : > { %p1833_p7 = pneg %p1832_p3 }
  0xf8   : > { %p1840_p6 = pnand %p1839_p1, %p1833_p7 }
  0xfa   : > { %1843 = shalt.err (!%p1840_p6)
}
  0xfb   : > { %s2024_s19 = smov 128   ;;  %s2025_s17 = smov 8  }
  0xfc   : > { %p2713_p8 = scmp.ne.s32.totalorder %s2693_s15, 0  ;;  %s2026_s0 = smov [#allocation9]  }
  0xfd   : > { %s377_s22 = sshll.u32 %s2026_s0, 4  ;;  %s2410_s18 = scalar_lea.hbm %s2636_s9, %s2258_s26  ;;  %s378_s22 = int_to_ptr.vmem [resolvable:$true] %s377_s22 }
  0xfe   : > { %1503 = dma.hbm_to_vmem [thread:$0]  (!%p2713_p8), %s2629_s2, 256, %s365_s10, [#allocation7], %s2024_s19, %s2024_s19, %s2025_s17  }
  0xff   : > { %s487_s28 = scalar_lea.vmem [#allocation16], %s2201_s24  ;;  %s1844_s29 = scalar_lea.hbm %s2630_s3, 256 }
 0x100   : > { %s494_s4 = sshll.u32 %s487_s28, 4  ;;  %p1845_p6 = scmp.ne.s32.totalorder %s2630_s3, %s1844_s29  ;;  %s495_s4 = int_to_ptr.vmem [resolvable:$true] %s494_s4 }
 0x101   : > { %p1851_p5 = scmp.lt.u32.totalorder %s1844_s29, %s2630_s3 }
 0x102   : > { %p1847_p0 = pnand %p1845_p6, %p2712_p13 }
 0x104   : > { %p1848_p4 = pneg %p1847_p0 }
 0x106   : > { %p1853_p2 = pnand %p1851_p5, %p1848_p4 }
 0x108   : > { %1856 = shalt.err (!%p1853_p2)
}
 0x109   : > { %s1857_s26 = scalar_lea.vmem %s378_s22, 256  ;;  %p1865_p10 = scmp.lt.s32.totalorder %s378_s22, %s378_s22 }
 0x10a   : > { %p1858_p11 = scmp.ne.s32.totalorder %s378_s22, %s1857_s26  ;;  %p1866_p9 = scmp.lt.s32.totalorder %s1857_s26, %s1857_s26 }
 0x10c   : > { %p1860_p3 = pnand %p1858_p11, %p2712_p13  ;;  %p1867_p1 = por %p1866_p9, %p1865_p10 }
 0x10e   : > { %p1861_p7 = pneg %p1860_p3 }
 0x110   : > { %p1868_p12 = pnand %p1867_p1, %p1861_p7 }
 0x112   : > { %1871 = shalt.err (!%p1868_p12)
}
 0x113   : > { %1506 = dma.hbm_to_vmem [thread:$0]  (!%p2713_p8), %s2630_s3, 256, %s378_s22, [#allocation10], %s2024_s19, %s2024_s19, %s2025_s17  }
 0x114   : > { %s1872_s13 = scalar_lea.hbm %s2410_s18, 16  ;;  %p2714_p6 = scmp.ne.s32.totalorder %s2700_s11, 0 }
 0x115   : > { %p1873_p13 = scmp.ne.s32.totalorder %s2410_s18, %s1872_s13  ;;  %s1877_s0 = scalar_lea.hbm %s2636_s9, 32 }
 0x116   : > { %p1878_p12 = scmp.lt.u32.totalorder %s2410_s18, %s2636_s9  ;;  %p1879_p5 = scmp.lt.u32.totalorder %s1877_s0, %s1872_s13 }
 0x117   : > { %p1875_p0 = pnand %p1873_p13, %p2714_p6  ;;  %p1881_p11 = scmp.lt.u32.totalorder %s1872_s13, %s2410_s18 }
 0x118   : > { %p1880_p2 = por %p1879_p5, %p1878_p12 }
 0x119   : > { %p1876_p4 = pneg %p1875_p0 }
 0x11a   : > { %p1882_p3 = por %p1881_p11, %p1880_p2 }
 0x11c   : > { %p1883_p7 = pnand %p1882_p3, %p1876_p4 }
 0x11e   : > { %1886 = shalt.err (!%p1883_p7)
}
 0x11f   : > { %s1887_s19 = scalar_lea.vmem %s495_s4, 16  ;;  %s2027_s17 = smov [#allocation16]  }
 0x120   : > { %p1888_p8 = scmp.ne.s32.totalorder %s495_s4, %s1887_s19  ;;  %s1892_s22 = sshll.u32 %s2027_s17, 4  ;;  %s1893_s22 = int_to_ptr.vmem [resolvable:$false] %s1892_s22 }
 0x121   : > { %s1894_s16 = scalar_lea.vmem %s1893_s22, 32  ;;  %p1895_p1 = scmp.lt.s32.totalorder %s495_s4, %s1893_s22 }
 0x122   : > { %p1890_p10 = pnand %p1888_p8, %p2714_p6  ;;  %p1896_p13 = scmp.lt.s32.totalorder %s1894_s16, %s1887_s19 }
 0x124   : > { %p1891_p9 = pneg %p1890_p10  ;;  %p1897_p0 = por %p1896_p13, %p1895_p1 }
 0x126   : > { %p1898_p5 = pnand %p1897_p0, %p1891_p9 }
 0x128   : > { %1901 = shalt.err (!%p1898_p5)
}
 0x129   : > { %p2715_p12 = scmp.ne.s32.totalorder %s2699_s14, 0  ;;  %p2716_p4 = scmp.ne.s32.totalorder %s2692_s12, 0 }
 0x12a   : > { %p2717_p6 = scmp.eq.s32.totalorder (!%p2716_p4), %s2118_s21, 0 }
 0x12b   : > { %1525 = dma.hbm_to_vmem [thread:$0]  (!%p2715_p12), %s2410_s18, 16, %s495_s4, %s2224_s23  }
 0x12c   : > { %503 = sbr.rel (%p2716_p4) target bundleno = 1274 (0x4fa), region = 60 }
 0x133   : > { %1975 = dma.done.wait (%p2717_p6), [#allocation4], 128   ;;  %p2718_p2 = pmov %p2717_p6 }
 0x135   : > { %1977 = vsyncadd (%p2718_p2), [#allocation4], 4294967168  ;;  %p2719_p11 = pmov %p2718_p2 }
 0x136   : > { %p2720_p3 = pmov %p2718_p2 }
 0x137   : > { %1979 = dma.done.wait (%p2719_p11), [#allocation7], 384  }
 0x138   : > { %1981 = vsyncadd (%p2720_p3), [#allocation7], 4294966912  ;;  %p2721_p7 = pmov %p2718_p2 }
 0x139   : > { %p2722_p8 = pmov %p2718_p2 }
 0x13a   : > { %1983 = dma.done.wait (%p2721_p7), [#allocation10], 256  }
 0x13b   : > { %1985 = vsyncadd (%p2722_p8), [#allocation10], 4294967040  ;;  %s2723_s12 = sld [smem:[#allocation27_spill]]  ;;  %s2724_s23 = sld [smem:[#allocation32_spill]] }
 0x13c   : > { %s521_s14 = sand.u32 1, %s2118_s21  }
 0x13d   : > { %s522_s28 = scalar_lea.sflag [#allocation4], %s521_s14 }
 0x141   : > { %s2465_s11 = sand.u32 1, %s2723_s12   ;;  %p2725_p10 = scmp.ne.s32.totalorder %s2724_s23, 0 }
 0x142   : > { %s1347_s18 = sshll.u32 %s2465_s11, 6 }
 0x143   : > { %s2468_s4 = scalar_lea.vmem [#allocation11], %s1347_s18 }
 0x144   : > { %1987 = dma.done.wait (%p2725_p10), %s522_s28, 2112  }
 0x145   : > { %1989 = vsyncadd (%p2725_p10), %s522_s28, 4294965184  ;;  %s1349_s30 = sshll.u32 %s2465_s11, 4  ;;  %s1350_s25 = sshll.u32 %s2465_s11, 3 }
 0x146   : > { %s533_s29 = scalar_lea.vmem [#allocation12], %s2465_s11  ;;  %s2477_s10 = scalar_lea.vmem [#allocation13], %s1347_s18 }
 0x147   : > { %s550_s20 = scalar_lea.vmem [#allocation14], %s2465_s11  ;;  %s558_s26 = scalar_lea.vmem [#allocation15], %s2465_s11 }
 0x148   : > { %s566_s1 = scalar_lea.vmem [#allocation16], %s2465_s11  ;;  %s2482_s6 = scalar_lea.vmem [#allocation17], %s1349_s30 }
 0x149   : > { %s2484_s13 = scalar_lea.vmem [#allocation18], %s1350_s25  ;;  %p2726_p9 = scmp.ne.s32.totalorder %s2118_s21, 0 }
 0x14a   : > { %v636_v0 = vld [vmem:[#allocation9] sm:$0xff] (!%p2726_p9)  ;;  %v637_v1 = vld [vmem:[#allocation9 + $0x8] sm:$0xff] (!%p2726_p9) }
 0x14b   : > { %635 = sbr.rel (%p2726_p9) target bundleno = 338 (0x152), region = 104  ;;  %638 = vst [vmem:[#allocation2] sm:$0xff] (!%p2726_p9), %v636_v0  ;;  %639 = vst [vmem:[#allocation2 + $0x8] sm:$0xff] (!%p2726_p9), %v637_v1 }
 0x152 PF: > { %v640_v2 = vld [vmem:[#allocation2] sm:$0xff]  ;;  %v641_v3 = vld [vmem:[#allocation2 + $0x8] sm:$0xff]  ;;  %v2028_v4 = vmov 0.0   ;;  %vm2029_vm0 = vmmov 0   ;;  %v1591_v6 = vld [vmem:[#allocation3] sm:$0xff]   ;;  %vm650_vm1 = vcmask 130048  }
 0x153   : > { %1406 = vmatprep.subr.bf16.mxu0 %v2028_v4  ;;  %v644_v5 = vpack.c.bf16 %v641_v3, %v640_v2  ;;  %1408 = vmatprep.mubr.msk.bf16.mxu0 %vm2029_vm0, %v2028_v4  ;;  %v1592_v7 = vld [vmem:[%s2468_s4] sm:$0xff]   ;;  %v1593_v8 = vld [vmem:[%s2468_s4 + $0x8] sm:$0xff]   ;;  %v1594_v9 = vld [vmem:[%s2468_s4 + $0x10] sm:$0xff]   ;;  %v2030_v31 = vmov 0   ;;  %v2031_v43 = vmov 0.0|0.0   ;;  %s2727_s24 = sld [smem:[#allocation33_spill]] }
 0x154   : > { %1412 = vmatprep.subr.bf16.mxu1 %v2028_v4  ;;  %1428 = vmatprep.mubr.msk.bf16.mxu1 %vm2029_vm0, %v2028_v4  ;;  %v1595_v10 = vld [vmem:[%s2468_s4 + $0x18] sm:$0xff]   ;;  %v1596_v11 = vld [vmem:[%s2468_s4 + $0x20] sm:$0xff]   ;;  %v1597_v12 = vld [vmem:[%s2468_s4 + $0x28] sm:$0xff]   ;;  %s1377_s5 = sshll.u32 %s2118_s21, 7  ;;  %s1081_s0 = sshll.u32 %s2482_s6, 4  ;;  %s2550_s0 = int_to_ptr.vmem [resolvable:$true] %s1081_s0 }
 0x155   : > { %1407 = vmatpush3.bf16.msra.mxu0 %v644_v5  ;;  %1413 = vmatpush3.bf16.msra.mxu1 %v1592_v7  ;;  %v1598_v13 = vld [vmem:[%s2468_s4 + $0x30] sm:$0xff]   ;;  %v1599_v14 = vld [vmem:[%s2468_s4 + $0x38] sm:$0xff]   ;;  %v1600_v15 = vld [vmem:[%s2477_s10] sm:$0xff]   ;;  %s2728_s19 = sld [smem:[#allocation40_spill]]  ;;  %s1064_s16 = scalar_lea.sflag [#allocation5], %s2465_s11 }
 0x156   : > { %1432 = vmatprep.subr.bf16.mxu0 %v2028_v4  ;;  %1414 = vmatprep.subr.bf16.mxu1 %v2028_v4  ;;  %v1601_v16 = vld [vmem:[%s2477_s10 + $0x8] sm:$0xff]   ;;  %v1602_v17 = vld [vmem:[%s2477_s10 + $0x10] sm:$0xff]   ;;  %v1603_v18 = vld [vmem:[%s2477_s10 + $0x18] sm:$0xff]   ;;  %s1902_s12 = scalar_lea.vmem %s2550_s0, 256  ;;  %s2032_s23 = smov [#allocation17]  }
 0x157   : > { %v1604_v19 = vld [vmem:[%s2477_s10 + $0x20] sm:$0xff]   ;;  %v1605_v20 = vld [vmem:[%s2477_s10 + $0x28] sm:$0xff]   ;;  %v1606_v28 = vld [vmem:[%s2477_s10 + $0x30] sm:$0xff]   ;;  %1590 = vset.pattern.permute.xlu0 %v2030_v31  ;;  %p1903_p1 = scmp.ne.s32.totalorder %s2550_s0, %s1902_s12  ;;  %s1906_s14 = sshll.u32 %s2032_s23, 4  ;;  %s1907_s14 = int_to_ptr.vmem [resolvable:$false] %s1906_s14 }
 0x158   : > { %1409 = vmatmul.mubr.msk.bf16.vlgmr.msra.gmra.mrb[0].mxu0 %vm650_vm1, %v1591_v6  ;;  %v1607_v29 = vld [vmem:[%s2477_s10 + $0x38] sm:$0xff]   ;;  %v926_v32 = vld [vmem:[#allocation8 + $0x8] sm:$0xff]  ;;  %s1908_s18 = scalar_lea.vmem %s1907_s14, 512  ;;  %p1909_p12 = scmp.lt.s32.totalorder %s2550_s0, %s1907_s14 }
 0x159   : > { %1448 = vmatprep.mubr.msk.bf16.mxu0 %vm2029_vm0, %v2028_v4  ;;  %1415 = vmatpush3.bf16.msra.mxu1 %v1593_v8  ;;  %v925_v30 = vld [vmem:[#allocation8] sm:$0xff]  ;;  %p2730_p13 = scmp.ne.s32.totalorder %s2727_s24, 0  ;;  %p1910_p4 = scmp.lt.s32.totalorder %s1908_s18, %s1902_s12 }
 0x15a   : > { %1416 = vmatprep.subr.bf16.mxu1 %v2028_v4  ;;  %1433 = vmatpush3.bf16.msra.mxu0 %v1600_v15  ;;  %v1354_v33 = vld [vmem:[%s533_s29] ss:$0 sm:$0xff] }
 0x15b   : > { %1434 = vmatprep.subr.bf16.mxu0 %v2028_v4  ;;  %929 = vperm.xlu0 %1590, %v925_v30   ;;  %v1363_v44 = vld [vmem:[%s550_s20] ss:$0 sm:$0xff]  ;;  %s2729_s22 = smov %s2728_s19  ;;  %s2548_s17 = scalar_lea.hbm %s2728_s19, %s1377_s5 }
 0x15c   : > { %p1904_p0 = pnand %p1903_p1, %p2730_p13  ;;  %p1911_p6 = por %p1910_p4, %p1909_p12 }
 0x15d   : > { %1417 = vmatpush3.bf16.msra.mxu1 %v1594_v9 }
 0x15e   : > { %1418 = vmatprep.subr.bf16.mxu1 %v2028_v4  ;;  %1435 = vmatpush3.bf16.msra.mxu0 %v1601_v16  ;;  %p1905_p5 = pneg %p1904_p0 }
 0x15f   : > { %1436 = vmatprep.subr.bf16.mxu0 %v2028_v4  ;;  %934 = vperm.xlu0 %1590, %v926_v32  }
 0x160   : > { %p1912_p2 = pnand %p1911_p6, %p1905_p5 }
 0x161   : > { %1419 = vmatpush3.bf16.msra.mxu1 %v1595_v10 }
 0x162   : > { %1420 = vmatprep.subr.bf16.mxu1 %v2028_v4  ;;  %1437 = vmatpush3.bf16.msra.mxu0 %v1602_v17 }
 0x163   : > { %1438 = vmatprep.subr.bf16.mxu0 %v2028_v4 }
 0x165   : > { %1421 = vmatpush3.bf16.msra.mxu1 %v1596_v11 }
 0x166   : > { %1422 = vmatprep.subr.bf16.mxu1 %v2028_v4  ;;  %1439 = vmatpush3.bf16.msra.mxu0 %v1603_v18  ;;  %v1372_v18 = vld [vmem:[%s558_s26] ss:$0 sm:$0xff] }
 0x167   : > { %1440 = vmatprep.subr.bf16.mxu0 %v2028_v4 }
 0x169   : > { %1423 = vmatpush3.bf16.msra.mxu1 %v1597_v12 }
 0x16a   : > { %1424 = vmatprep.subr.bf16.mxu1 %v2028_v4  ;;  %1441 = vmatpush3.bf16.msra.mxu0 %v1604_v19 }
 0x16b   : > { %1442 = vmatprep.subr.bf16.mxu0 %v2028_v4 }
 0x16d   : > { %1425 = vmatpush3.bf16.msra.mxu1 %v1598_v13 }
 0x16e   : > { %1426 = vmatprep.subr.bf16.mxu1 %v2028_v4  ;;  %1443 = vmatpush3.bf16.msra.mxu0 %v1605_v20 }
 0x16f   : > { %1444 = vmatprep.subr.bf16.mxu0 %v2028_v4 }
 0x171   : > { %1427 = vmatpush3.bf16.msra.mxu1 %v1599_v14 }
 0x172   : > { %1445 = vmatpush3.bf16.msra.mxu0 %v1606_v28  ;;  %1459 = vmatprep.subr.bf16.mxu1 %v2031_v43 }
 0x173   : > { %1446 = vmatprep.subr.bf16.mxu0 %v2028_v4 }
 0x176   : > { %1447 = vmatpush3.bf16.msra.mxu0 %v1607_v29 }
 0x1da   : > { %v930_v45 = vpop.permute.xlu0 %929 }
 0x1de   : > { %v935_v55 = vpop.permute.xlu0 %934 }
 0x22b   : > { %v688_v21 = vpop.f32.mrb[0].mxu0 }
 0x22c   : > { %v1410_v22 = vpop.f32.mrb[1].mxu0  ;;  %v689_v24 = vadd.f32 %v688_v21, %v640_v2  ;;  %v1373_v21 = vld [vmem:[%s566_s1] ss:$0 sm:$0xff] }
 0x22d   : > { %v691_v23 = vpop.f32.mrb[2].mxu0 }
 0x22e   : > { %v692_v25 = vadd.f32 %v691_v23, %v641_v3  ;;  %v1411_v26 = vpop.f32.mrb[3].mxu0 }
 0x230   : > { %v695_v27 = vpack.c.bf16 %v692_v25, %v689_v24 }
 0x232   : > { %1429 = vmatmul.mubr.bf16.vlgmr.msra.gmra.mrb[0].mxu1 %v695_v27  ;;  %v988_v27 = vld [vmem:[#allocation6] sm:$0xff] }
 0x233   : > { %1456 = vmatprep.mubr.msk.f32.mxu1 %vm2029_vm0, %v2028_v4 }
 0x305   : > { %v801_v34 = vpop.f32.mrb[0].mxu1 }
 0x306   : > { %v802_v35 = vadd.f32 %v1354_v33, %v801_v34  ;;  %v1430_v36 = vpop.f32.mrb[1].mxu1 }
 0x307   : > { %v804_v37 = vpop.f32.mrb[2].mxu1 }
 0x308   : > { %v805_v38 = vadd.f32 %v1354_v33, %v804_v37  ;;  %v1431_v39 = vpop.f32.mrb[3].mxu1  ;;  %v808_v40 = vmax.f32 %v802_v35, 0.0 }
 0x30a   : > { %v809_v41 = vmax.f32 %v805_v38, 0.0 }
 0x30c   : > { %v810_v42 = vpack.c.bf16 %v809_v41, %v808_v40 }
 0x30e   : > { %1449 = vmatmul.mubr.bf16.vlgmr.msra.gmra.mrb[4].mxu0 %v810_v42 }
 0x3e1   : > { %v916_v46 = vpop.f32.mrb[4].mxu0 }
 0x3e2   : > { %v917_v47 = vadd.f32 %v1363_v44, %v916_v46  ;;  %v1450_v48 = vpop.f32.mrb[5].mxu0 }
 0x3e3   : > { %v919_v49 = vpop.f32.mrb[6].mxu0 }
 0x3e4   : > { %v923_v50 = vmax.f32 %v917_v47, 0.0  ;;  %v920_v51 = vadd.f32 %v1363_v44, %v919_v49  ;;  %v1451_v52 = vpop.f32.mrb[7].mxu0 }
 0x3e6   : > { %v937_v53 = vmul.f32 %v930_v45, %v923_v50  ;;  %v924_v54 = vmax.f32 %v920_v51, 0.0 }
 0x3e8   : > { %v938_v56 = vmul.f32 %v935_v55, %v924_v54  ;;  %v946_v57 = vmul.f32 %v937_v53, %v923_v50 }
 0x3ea   : > { %v939_v58 = vadd.f32 %v938_v56, %v937_v53  ;;  %v947_v59 = vmul.f32 %v938_v56, %v924_v54 }
 0x3ec   : > { %v940_v60 = vrot.slane %v939_v58, 4  ;;  %v948_v61 = vadd.f32 %v947_v59, %v946_v57 }
 0x3ee   : > { %v941_v62 = vadd.f32 %v940_v60, %v939_v58  ;;  %v949_v63 = vrot.slane %v948_v61, 4 }
 0x3f0   : > { %v942_v0 = vrot.slane %v941_v62, 2  ;;  %v950_v1 = vadd.f32 %v949_v63, %v948_v61 }
 0x3f2   : > { %v943_v2 = vadd.f32 %v942_v0, %v941_v62  ;;  %v951_v3 = vrot.slane %v950_v1, 2 }
 0x3f4   : > { %v944_v4 = vrot.slane %v943_v2, 1  ;;  %v952_v5 = vadd.f32 %v951_v3, %v950_v1 }
 0x3f6   : > { %v945_v6 = vadd.f32 %v944_v4, %v943_v2  ;;  %v953_v7 = vrot.slane %v952_v5, 1 }
 0x3f8   : > { %v954_v8 = vadd.f32 %v953_v7, %v952_v5  ;;  %v955_v9 = vmul.f32 0.0625, %v945_v6 }
 0x3fa   : > { %v956_v10 = vmul.f32 0.0625, %v954_v8  ;;  %v957_v11 = vmul.f32 %v955_v9, %v955_v9  ;;  %v960_v12 = vsub.f32 %v923_v50, %v955_v9  ;;  %v961_v13 = vsub.f32 %v924_v54, %v955_v9 }
 0x3fc   : > { %v958_v14 = vsub.f32 %v956_v10, %v957_v11 }
 0x3fe   : > { %v959_v15 = vmax.f32 %v958_v14, 0.0 }
 0x400   : > { %v962_v16 = vadd.f32 1e-05, %v959_v15 }
 0x402   : > { %1608 = vrsqrt.f32 %v962_v16 }
 0x40c   : > { %v1609_v17 = vpop.eup %1608 }
 0x40d   : > { %v964_v19 = vmul.f32 %v1609_v17, %v960_v12  ;;  %v965_v20 = vmul.f32 %v1609_v17, %v961_v13 }
 0x40f   : > { %v973_v22 = vmul.f32 %v1372_v18, %v964_v19  ;;  %v974_v23 = vmul.f32 %v1372_v18, %v965_v20 }
 0x411   : > { %v983_v24 = vadd.f32 %v1373_v21, %v974_v23  ;;  %v982_v25 = vadd.f32 %v1373_v21, %v973_v22 }
 0x413   : > { %985 = vst [vmem:[#allocation2 + $0x8] sm:$0xff] %v983_v24  ;;  %987 = vst [vmem:[%s2482_s6 + $0x8] sm:$0xff] %v983_v24  ;;  %v1460_v26 = vpack.c.bf16 %v983_v24, %v982_v25 }
 0x414   : > { %984 = vst [vmem:[#allocation2] sm:$0xff] %v982_v25  ;;  %986 = vst [vmem:[%s2482_s6] sm:$0xff] %v982_v25 }
 0x415   : > { %1461 = vmatpush3.bf16.msra.mxu1 %v1460_v26 }
 0x418   : > { %1457 = vmatmul.mubr.msk.f32.vlgmr.msra.gmra.mrb[4].mxu1 %vm650_vm1, %v988_v27 }
 0x419   : > { %1915 = shalt.err (!%p1912_p2)
}
 0x41a   : > { %s1916_s28 = scalar_lea.hbm %s2548_s17, 256  ;;  %s1920_s25 = scalar_lea.hbm %s2729_s22, 512 }
 0x41b   : > { %p1917_p11 = scmp.ne.s32.totalorder %s2548_s17, %s1916_s28  ;;  %p1921_p8 = scmp.lt.u32.totalorder %s2548_s17, %s2729_s22 }
 0x41c   : > { %p1922_p10 = scmp.lt.u32.totalorder %s1920_s25, %s1916_s28  ;;  %p1924_p1 = scmp.lt.u32.totalorder %s1916_s28, %s2548_s17 }
 0x41d   : > { %p1918_p3 = pnand %p1917_p11, %p2730_p13 }
 0x41e   : > { %p1923_p9 = por %p1922_p10, %p1921_p8 }
 0x41f   : > { %p1919_p7 = pneg %p1918_p3 }
 0x420   : > { %p1925_p0 = por %p1924_p1, %p1923_p9 }
 0x422   : > { %p1926_p5 = pnand %p1925_p0, %p1919_p7 }
 0x424   : > { %1929 = shalt.err (!%p1926_p5)
}
 0x425   : > { %s2033_s20 = smov 128   ;;  %s2034_s26 = smov 256  }
 0x426   : > { %s2035_s1 = smov 8   ;;  %s1097_s6 = sshll.u32 %s2484_s13, 4  ;;  %s2584_s6 = int_to_ptr.vmem [resolvable:$true] %s1097_s6 }
 0x427   : > { %1490 = dma.vmem_to_hbm [thread:$0]  (%p2730_p13), %s2550_s0, 256, %s2548_s17, %s1064_s16, %s2033_s20, %s2034_s26, %s2035_s1  }
 0x428   : > { %s2731_s19 = sld [smem:[#allocation41_spill]]  ;;  %s1069_s14 = scalar_lea.sflag [#allocation19], %s2465_s11 }
 0x429   : > { %s1930_s18 = scalar_lea.vmem %s2584_s6, 128  ;;  %s2036_s21 = smov [#allocation18]  }
 0x42a   : > { %p1931_p12 = scmp.ne.s32.totalorder %s2584_s6, %s1930_s18  ;;  %s1934_s0 = sshll.u32 %s2036_s21, 4  ;;  %s1935_s0 = int_to_ptr.vmem [resolvable:$false] %s1934_s0 }
 0x42b   : > { %s1936_s17 = scalar_lea.vmem %s1935_s0, 256  ;;  %p1937_p2 = scmp.lt.s32.totalorder %s2584_s6, %s1935_s0 }
 0x42c   : > { %p1932_p4 = pnand %p1931_p12, %p2730_p13  ;;  %p1938_p11 = scmp.lt.s32.totalorder %s1936_s17, %s1930_s18 }
 0x42e   : > { %s2732_s12 = smov %s2731_s19  ;;  %s2582_s23 = scalar_lea.hbm %s2731_s19, %s1377_s5 }
 0x42f   : > { %p1933_p6 = pneg %p1932_p4  ;;  %p1939_p3 = por %p1938_p11, %p1937_p2 }
 0x431   : > { %p1940_p7 = pnand %p1939_p3, %p1933_p6 }
 0x4eb   : > { %v1058_v28 = vpop.f32.mrb[4].mxu1 }
 0x4ec   : > { %1062 = vst [vmem:[%s2484_s13] sm:$0xff] %v1058_v28  ;;  %v1458_v29 = vpop.f32.mrb[5].mxu1 }
 0x4ed   : > { %1943 = shalt.err (!%p1940_p7)
}
 0x4ee   : > { %s1944_s11 = scalar_lea.hbm %s2582_s23, 128  ;;  %s1948_s16 = scalar_lea.hbm %s2732_s12, 256 }
 0x4ef   : > { %p1945_p8 = scmp.ne.s32.totalorder %s2582_s23, %s1944_s11  ;;  %p1949_p1 = scmp.lt.u32.totalorder %s2582_s23, %s2732_s12 }
 0x4f0   : > { %p1950_p0 = scmp.lt.u32.totalorder %s1948_s16, %s1944_s11  ;;  %p1952_p12 = scmp.lt.u32.totalorder %s1944_s11, %s2582_s23 }
 0x4f1   : > { %p1946_p10 = pnand %p1945_p8, %p2730_p13 }
 0x4f2   : > { %p1951_p5 = por %p1950_p0, %p1949_p1 }
 0x4f3   : > { %p1947_p9 = pneg %p1946_p10 }
 0x4f4   : > { %p1953_p4 = por %p1952_p12, %p1951_p5 }
 0x4f6   : > { %p1954_p6 = pnand %p1953_p4, %p1947_p9 }
 0x4f8   : > { %1957 = shalt.err (!%p1954_p6)
}
 0x4f9   : > { %1491 = dma.vmem_to_hbm [thread:$0]  (%p2730_p13), %s2584_s6, 128, %s2582_s23, %s1069_s14  }
 0x4fa PF: > { %s2733_s30 = sld [smem:[#allocation26_spill]]  ;;  %s2734_s25 = sld [smem:[#allocation34_spill]] }
 0x4fb   : > { %s2735_s29 = sld [smem:[#allocation29_spill]] }
 0x500   : > { %s1109_s10 = sand.u32 1, %s2733_s30   ;;  %p2736_p2 = scmp.ne.s32.totalorder %s2734_s25, 0 }
 0x501   : > { %p2737_p11 = scmp.ge.s32.totalorder %s2735_s29, 2  ;;  %s1110_s20 = scalar_lea.sflag [#allocation5], %s1109_s10 }
 0x503   : > { %p1527_p3 = pnand %p2737_p11, %p2736_p2 }
 0x505   : > { %1991 = dma.done.wait (!%p1527_p3), %s1110_s20, 256  }
 0x506   : > { %1993 = vsyncadd (!%p1527_p3), %s1110_s20, 4294967040  ;;  %s1119_s26 = scalar_lea.sflag [#allocation19], %s1109_s10 }
 0x507   : > { %1995 = dma.done.wait (!%p1527_p3), %s1119_s26, 128  }
 0x508   : > { %1997 = vsyncadd (!%p1527_p3), %s1119_s26, 4294967168  ;;  %s2738_s20 = sld [smem:[#allocation30_spill]]  ;;  %s2739_s17 = sld [smem:[#allocation27_spill]] }
 0x509   : > { %s2740_s18 = sld [smem:[#allocation28_spill]]  ;;  %s2741_s19 = sld [smem:[#allocation31_spill]] }
 0x50e   : > { %p28_p13 = scmp.ge.s32.totalorder %s2738_s20, 4  }
 0x510   :  { %30 = sbr.rel (!%p28_p13) target bundleno = 16 (0x10), region = 196 }
 0x517   :  { %1124 = vsyncpa [#allocation4], 1 }
 0x518   :  { %1126 = vsyncpa [#allocation4 + $0x1], 1 }
 0x519   :  { %1127 = vsyncpa [#allocation7], 1 }
 0x51a   :  { %1128 = vsyncpa [#allocation10], 1 }
 0x51b   :  { %1129 = vsyncpa [#allocation5], 1 }
 0x51c   :  { %1131 = vsyncpa [#allocation5 + $0x1], 1 }
 0x51d   :  { %1132 = vsyncpa [#allocation19], 1 }
 0x51e   :  { %1134 = vsyncpa [#allocation19 + $0x1], 1 }

</bundles_post_ra>
